<compile_context>
chip_gen: v6e
topology: v6e:2x2x1
jax: 0.10.0
libtpu: 0.0.40
codegen_flags: <defaults>
</compile_context>

<pallas_src>
import functools

import jax
import jax.numpy as jnp
from jax.experimental import pallas as pl
from jax.experimental.pallas import tpu as pltpu


_FILL = -100.0   # fill value used by embed_with_masking for NaN rows
_NEG = -1.0e30   # "never wins the max" fill for invalid neighbours


def _row_has_nan(x):
    """[..., F] -> [..., 1] float32: 1.0 if the row contains any NaN, else 0.0."""
    return jnp.max(jnp.where(jnp.isnan(x), 1.0, 0.0), axis=-1, keepdims=True)


def _hidden_state_mlp_pooling_kernel(
    feat_ref,                 # [Bb, Tp, 4]  = [obs2_x, obs2_y, 4*vel_x, 4*vel_y]
    hid_ref,                  # [Bb, Tp, H]
    wsv_ref, bsv_ref,         # fused spatial|vel embedding: [4, Csv], [1, Csv]
    wh_ref, bh_ref,           # hidden embedding:            [H, Ch],  [1, Ch]
    wosv_ref, woh_ref, bo_ref,  # out projection split:      [Csv, O], [Ch, O], [1, O]
    out_ref,                  # [Bb, Tp, O]
    *, cs,                    # static: mlp_dim_spatial (lane split inside Csv)
):
    feat = feat_ref[...]
    hid = hid_ref[...]
    bb, tp, _ = feat.shape
    h = hid.shape[-1]
    csv = wsv_ref.shape[-1]
    ch = wh_ref.shape[-1]
    o = wosv_ref.shape[-1]

    # Per-agent NaN masks (padded rows are NaN-filled by the wrapper -> masked).
    nan_pos = _row_has_nan(feat[..., 0:2])       # [Bb, Tp, 1]
    nan_vel = _row_has_nan(feat[..., 2:4])       # [Bb, Tp, 1]
    nan_hid = _row_has_nan(hid)                  # [Bb, Tp, 1]

    feat_c = jnp.where(jnp.isnan(feat), 0.0, feat)
    hid_c = jnp.where(jnp.isnan(hid), 0.0, hid)

    # Fused per-agent projection through the block-diagonal [4 -> Csv] weight.
    # (x_j - x_i)@W + b == x_j@W - x_i@W + b, so only per-agent projections exist.
    wsv = wsv_ref[...]
    p = (feat_c[..., 0:1] * wsv[0:1, :] + feat_c[..., 1:2] * wsv[1:2, :]
         + feat_c[..., 2:3] * wsv[2:3, :] + feat_c[..., 3:4] * wsv[3:4, :])
    # p: [Bb, Tp, Csv]  (lanes [0,cs) = spatial, [cs,Csv) = velocity)

    # Branch-specific agent mask laid out over the fused lanes.
    lane = jax.lax.broadcasted_iota(jnp.int32, (bb, tp, csv), 2)
    agent_mask = jnp.where(lane < cs, nan_pos, nan_vel)      # [Bb, Tp, Csv]

    # Invalid neighbours can never win the per-scene max.
    p_neigh = jnp.where(agent_mask > 0.0, _NEG, p)
    m_sv = jnp.max(p_neigh, axis=1, keepdims=True)           # [Bb, 1, Csv]

    # pooled = ReLU(max_valid_j p_j - p_i + b); NaN egos -> exact -100 rows.
    pooled_sv = jnp.maximum(m_sv - p + bsv_ref[...], 0.0)
    pooled_sv = jnp.where(agent_mask > 0.0, _FILL, pooled_sv)  # [Bb, Tp, Csv]

    # Hidden-state branch: shared across every ego agent of a scene.
    e_h = jnp.maximum(
        jnp.dot(hid_c.reshape(bb * tp, h), wh_ref[...],
                preferred_element_type=jnp.float32).reshape(bb, tp, ch)
        + bh_ref[...],
        0.0)
    e_h = jnp.where(nan_hid > 0.0, _FILL, e_h)
    pooled_h = jnp.max(e_h, axis=1)                           # [Bb, Ch]

    # out = pooled_sv @ Wo_sv + (pooled_h @ Wo_h + bo)  (hidden term is per scene)
    hid_term = (jnp.dot(pooled_h, woh_ref[...],
                        preferred_element_type=jnp.float32) + bo_ref[...])   # [Bb, O]
    out = jnp.dot(pooled_sv.reshape(bb * tp, csv), wosv_ref[...],
                  preferred_element_type=jnp.float32).reshape(bb, tp, o)
    out_ref[...] = out + hid_term[:, None, :]


def hidden_state_mlp_pooling_forward(hidden_states, obs1, obs2, params):
    """hidden_states: [B, T, hidden_dim]; obs1, obs2: [B, T, 2] (NaN = invisible).

    Returns interaction vectors of shape [B*T, out_dim], matching the PyTorch
    module's `.view(batch_size * num_tracks, -1)` output.
    """
    ws, bs, wv, bv, wh, bh, wo, bo = params
    f32 = jnp.float32
    B, T, _ = obs2.shape
    H = hidden_states.shape[-1]
    Cs, Cv, Ch = ws.shape[1], wv.shape[1], wh.shape[1]
    Csv = Cs + Cv
    O = wo.shape[1]

    obs2 = obs2.astype(f32)
    obs1 = obs1.astype(f32)
    hid = hidden_states.astype(f32)
    vel4 = 4.0 * (obs2 - obs1)                       # NaN-preserving
    feat = jnp.concatenate([obs2, vel4], axis=-1)    # [B, T, 4]

    # Track padding (multiple of 8 sublanes) and scene packing along batch:
    # the kernel is linear in T, so a whole scene stays resident per grid step;
    # tiny scenes are packed to amortize the ~0.35us/step overhead, while B>=2
    # keeps at least 2 parallel grid steps (v7x megacore occupancy).
    Tp = max(8, -(-T // 8) * 8)
    Bb = max(1, 256 // Tp)
    if B >= 2:
        Bb = min(Bb, (B + 1) // 2)
    Bb = max(1, min(Bb, B))
    Bp = -(-B // Bb) * Bb
    nb = Bp // Bb

    def pad_nan(x):
        tpad, bpad = Tp - T, Bp - B
        if tpad:
            x = jnp.concatenate(
                [x, jnp.full((B, tpad, x.shape[-1]), jnp.nan, f32)], axis=1)
        if bpad:
            x = jnp.concatenate(
                [x, jnp.full((bpad, Tp, x.shape[-1]), jnp.nan, f32)], axis=0)
        return x

    feat_p = pad_nan(feat)
    hid_p = pad_nan(hid)

    # Fused spatial|velocity embedding as one block-diagonal [4, Csv] weight.
    wsv = jnp.zeros((4, Csv), f32)
    wsv = wsv.at[0:2, 0:Cs].set(ws.astype(f32))
    wsv = wsv.at[2:4, Cs:].set(wv.astype(f32))
    bsv = jnp.concatenate([bs, bv]).reshape(1, Csv).astype(f32)

    # Out projection split so the hidden contribution is a per-scene constant:
    # PyTorch concat order is [spatial | hidden | velocity].
    wo_f = wo.astype(f32)
    wo_sv = jnp.concatenate([wo_f[0:Cs], wo_f[Cs + Ch:]], axis=0)   # [Csv, O]
    wo_h = wo_f[Cs:Cs + Ch]                                         # [Ch, O]
    bo2 = bo.reshape(1, O).astype(f32)
    wh2 = wh.astype(f32)
    bh2 = bh.reshape(1, Ch).astype(f32)

    kernel = functools.partial(_hidden_state_mlp_pooling_kernel, cs=Cs)

    def wspec(shape):
        return pl.BlockSpec(shape, lambda g: (0, 0))

    out = pl.pallas_call(
        kernel,
        out_shape=jax.ShapeDtypeStruct((Bp, Tp, O), f32),
        grid=(nb,),
        in_specs=[
            pl.BlockSpec((Bb, Tp, 4), lambda g: (g, 0, 0)),
            pl.BlockSpec((Bb, Tp, H), lambda g: (g, 0, 0)),
            wspec((4, Csv)), wspec((1, Csv)),
            wspec((H, Ch)), wspec((1, Ch)),
            wspec((Csv, O)), wspec((Ch, O)), wspec((1, O)),
        ],
        out_specs=pl.BlockSpec((Bb, Tp, O), lambda g: (g, 0, 0)),
        compiler_params=pltpu.CompilerParams(
            dimension_semantics=("parallel",)),
    )(feat_p, hid_p, wsv, bsv, wh2, bh2, wo_sv, wo_h, bo2)

    # Padded (NaN-filled) rows/scenes produce garbage and are sliced off here.
    return out[:B, :T, :].reshape(B * T, O)


def _reference_forward(hidden_states, obs1, obs2, params):
    """Faithful pure-JAX translation of the PyTorch forward (for validation)."""
    ws, bs, wv, bv, wh, bh, wo, bo = params
    B, T, _ = obs2.shape
    hp = jax.lax.Precision.HIGHEST

    def embed_mask(x, w, b):
        nan_mask = jnp.any(jnp.isnan(x), axis=-1, keepdims=True)
        xc = jnp.where(jnp.isnan(x), 0.0, x)
        e = jnp.maximum(jnp.dot(xc, w, precision=hp) + b, 0.0)
        return jnp.where(nan_mask, _FILL, e)

    rel_obs = obs2[:, None, :, :] - obs2[:, :, None, :]            # [B,T,T,2]
    emb_s = embed_mask(rel_obs, ws, bs)                            # [B,T,T,Cs]
    emb_h = embed_mask(hidden_states, wh, bh)                      # [B,T,Ch]
    emb_h = jnp.broadcast_to(emb_h[:, None, :, :], (B, T, T, bh.shape[-1]))
    vel = obs2 - obs1
    rel_vel = vel[:, None, :, :] - vel[:, :, None, :]
    emb_v = embed_mask(rel_vel * 4.0, wv, bv)                      # [B,T,T,Cv]
    embedded = jnp.concatenate([emb_s, emb_h, emb_v], axis=-1)
    pooled = jnp.max(embedded, axis=2)                             # [B,T,mlp_dim]
    out = jnp.dot(pooled, wo, precision=hp) + bo
    return out.reshape(B * T, -1)


def _init_params(key, hidden_dim, mlp_spatial, mlp_vel, mlp_hidden, out_dim):
    """PyTorch-default-style uniform init; weights stored as [in, out] (W.T)."""
    ks = jax.random.split(key, 8)

    def u(k, shape, fan_in):
        bound = 1.0 / float(fan_in) ** 0.5
        return jax.random.uniform(k, shape, jnp.float32, -bound, bound)

    mlp_dim = mlp_spatial + mlp_hidden + mlp_vel
    ws = u(ks[0], (2, mlp_spatial), 2)                    # spatial_embedding
    bs = u(ks[1], (mlp_spatial,), 2)
    wv = u(ks[2], (2, mlp_vel), 2)                        # vel_embedding
    bv = u(ks[3], (mlp_vel,), 2)
    wh = u(ks[4], (hidden_dim, mlp_hidden), hidden_dim)   # hidden_embedding
    bh = u(ks[5], (mlp_hidden,), hidden_dim)
    wo = u(ks[6], (mlp_dim, out_dim), mlp_dim)            # out_projection
    bo = u(ks[7], (out_dim,), mlp_dim)
    return (ws, bs, wv, bv, wh, bh, wo, bo)


if __name__ == "__main__":
    key = jax.random.PRNGKey(0)
    k1, k2, k3, kp = jax.random.split(key, 4)

    batch, tracks = 2, 8
    hidden_dim = 128
    mlp_spatial, mlp_vel, mlp_dim = 32, 32, 128
    mlp_hidden = mlp_dim - mlp_spatial - mlp_vel          # 64
    out_dim = hidden_dim                                  # out_dim=None -> hidden_dim

    obs1 = jax.random.normal(k1, (batch, tracks, 2), jnp.float32)
    obs2 = obs1 + 0.1 * jax.random.normal(k2, (batch, tracks, 2), jnp.float32)
    hidden_states = jax.random.normal(k3, (batch, tracks, hidden_dim), jnp.float32)

    # Agent (1, 3): fully invisible.  Agent (0, 5): missing only at t-1
    # (position valid, velocity NaN) to exercise both masking paths.
    obs1 = obs1.at[1, 3, :].set(jnp.nan)
    obs2 = obs2.at[1, 3, :].set(jnp.nan)
    obs1 = obs1.at[0, 5, 0].set(jnp.nan)

    params = _init_params(kp, hidden_dim, mlp_spatial, mlp_vel, mlp_hidden, out_dim)

    out = hidden_state_mlp_pooling_forward(hidden_states, obs1, obs2, params)
    jax.block_until_ready(out)

    ref = _reference_forward(hidden_states, obs1, obs2, params)
    assert out.shape == (batch * tracks, out_dim), out.shape
    max_err = float(jnp.max(jnp.abs(out - ref)))
    assert jnp.allclose(out, ref, atol=1e-2, rtol=1e-2), max_err

    print("KERNEL_OK")
</pallas_src>

<mosaic_0001>
module attributes {stable_mosaic.version = 11 : i64} {
  func.func @_hidden_state_mlp_pooling_kernel(%arg0: i32, %arg1: memref<1x8x4xf32, #tpu.memory_space<vmem>>, %arg2: memref<1x8x128xf32, #tpu.memory_space<vmem>>, %arg3: memref<4x64xf32, #tpu.memory_space<vmem>>, %arg4: memref<1x64xf32, #tpu.memory_space<vmem>>, %arg5: memref<128x64xf32, #tpu.memory_space<vmem>>, %arg6: memref<1x64xf32, #tpu.memory_space<vmem>>, %arg7: memref<64x128xf32, #tpu.memory_space<vmem>>, %arg8: memref<64x128xf32, #tpu.memory_space<vmem>>, %arg9: memref<1x128xf32, #tpu.memory_space<vmem>>, %arg10: memref<1x8x128xf32, #tpu.memory_space<vmem>>) attributes {dimension_semantics = [#tpu.dimension_semantics<parallel>], iteration_bounds = array<i64: 2>, scalar_prefetch = 0 : i64, scratch_operands = 0 : i64, tpu.core_type = #tpu.core_type<tc>, window_params = [{transform_indices = @transform_0, window_bounds = array<i64: 1, 8, 4>}, {transform_indices = @transform_1, window_bounds = array<i64: 1, 8, 128>}, {pipeline_mode = #tpu.pipeline_mode<synchronous>, transform_indices = @transform_2, window_bounds = array<i64: 4, 64>}, {pipeline_mode = #tpu.pipeline_mode<synchronous>, transform_indices = @transform_3, window_bounds = array<i64: 1, 64>}, {pipeline_mode = #tpu.pipeline_mode<synchronous>, transform_indices = @transform_4, window_bounds = array<i64: 128, 64>}, {pipeline_mode = #tpu.pipeline_mode<synchronous>, transform_indices = @transform_5, window_bounds = array<i64: 1, 64>}, {pipeline_mode = #tpu.pipeline_mode<synchronous>, transform_indices = @transform_6, window_bounds = array<i64: 64, 128>}, {pipeline_mode = #tpu.pipeline_mode<synchronous>, transform_indices = @transform_7, window_bounds = array<i64: 64, 128>}, {pipeline_mode = #tpu.pipeline_mode<synchronous>, transform_indices = @transform_8, window_bounds = array<i64: 1, 128>}, {transform_indices = @transform_9, window_bounds = array<i64: 1, 8, 128>}]} {
    %c0 = arith.constant 0 : index
    %c0_0 = arith.constant 0 : index
    %c0_1 = arith.constant 0 : index
    %0 = vector.load %arg1[%c0, %c0_0, %c0_1] : memref<1x8x4xf32, #tpu.memory_space<vmem>>, vector<1x8x4xf32>
    %c0_2 = arith.constant 0 : index
    %c0_3 = arith.constant 0 : index
    %c0_4 = arith.constant 0 : index
    %1 = vector.load %arg2[%c0_2, %c0_3, %c0_4] : memref<1x8x128xf32, #tpu.memory_space<vmem>>, vector<1x8x128xf32>
    %2 = vector.extract_strided_slice %0 {offsets = [0, 0, 0], sizes = [1, 8, 2], strides = [1, 1, 1]} : vector<1x8x4xf32> to vector<1x8x2xf32>
    %3 = arith.cmpf one, %2, %2 : vector<1x8x2xf32>
    %cst = arith.constant 1.000000e+00 : f32
    %cst_5 = arith.constant 0.000000e+00 : f32
    %4 = vector.broadcast %cst : f32 to vector<1x8x2xf32>
    %5 = vector.broadcast %cst_5 : f32 to vector<1x8x2xf32>
    %6 = arith.select %3, %4, %5 : vector<1x8x2xi1>, vector<1x8x2xf32>
    %cst_6 = arith.constant dense<0xFF800000> : vector<1x8xf32>
    %7 = vector.multi_reduction <maximumf>, %6, %cst_6 [2] : vector<1x8x2xf32> to vector<1x8xf32>
    %8 = vector.shape_cast %7 : vector<1x8xf32> to vector<1x8x1xf32>
    %9 = vector.extract_strided_slice %0 {offsets = [0, 0, 2], sizes = [1, 8, 2], strides = [1, 1, 1]} : vector<1x8x4xf32> to vector<1x8x2xf32>
    %10 = arith.cmpf one, %9, %9 : vector<1x8x2xf32>
    %cst_7 = arith.constant 1.000000e+00 : f32
    %cst_8 = arith.constant 0.000000e+00 : f32
    %11 = vector.broadcast %cst_7 : f32 to vector<1x8x2xf32>
    %12 = vector.broadcast %cst_8 : f32 to vector<1x8x2xf32>
    %13 = arith.select %10, %11, %12 : vector<1x8x2xi1>, vector<1x8x2xf32>
    %cst_9 = arith.constant dense<0xFF800000> : vector<1x8xf32>
    %14 = vector.multi_reduction <maximumf>, %13, %cst_9 [2] : vector<1x8x2xf32> to vector<1x8xf32>
    %15 = vector.shape_cast %14 : vector<1x8xf32> to vector<1x8x1xf32>
    %16 = arith.cmpf one, %1, %1 : vector<1x8x128xf32>
    %cst_10 = arith.constant 1.000000e+00 : f32
    %cst_11 = arith.constant 0.000000e+00 : f32
    %17 = vector.broadcast %cst_10 : f32 to vector<1x8x128xf32>
    %18 = vector.broadcast %cst_11 : f32 to vector<1x8x128xf32>
    %19 = arith.select %16, %17, %18 : vector<1x8x128xi1>, vector<1x8x128xf32>
    %cst_12 = arith.constant dense<0xFF800000> : vector<1x8xf32>
    %20 = vector.multi_reduction <maximumf>, %19, %cst_12 [2] : vector<1x8x128xf32> to vector<1x8xf32>
    %21 = vector.shape_cast %20 : vector<1x8xf32> to vector<1x8x1xf32>
    %22 = arith.cmpf one, %0, %0 : vector<1x8x4xf32>
    %cst_13 = arith.constant 0.000000e+00 : f32
    %23 = vector.broadcast %cst_13 : f32 to vector<1x8x4xf32>
    %24 = arith.select %22, %23, %0 : vector<1x8x4xi1>, vector<1x8x4xf32>
    %25 = arith.cmpf one, %1, %1 : vector<1x8x128xf32>
    %cst_14 = arith.constant 0.000000e+00 : f32
    %26 = vector.broadcast %cst_14 : f32 to vector<1x8x128xf32>
    %27 = arith.select %25, %26, %1 : vector<1x8x128xi1>, vector<1x8x128xf32>
    %c0_15 = arith.constant 0 : index
    %c0_16 = arith.constant 0 : index
    %28 = vector.load %arg3[%c0_15, %c0_16] : memref<4x64xf32, #tpu.memory_space<vmem>>, vector<4x64xf32>
    %29 = vector.extract_strided_slice %24 {offsets = [0, 0, 0], sizes = [1, 8, 1], strides = [1, 1, 1]} : vector<1x8x4xf32> to vector<1x8x1xf32>
    %30 = vector.extract_strided_slice %28 {offsets = [0, 0], sizes = [1, 64], strides = [1, 1]} : vector<4x64xf32> to vector<1x64xf32>
    %31 = vector.shape_cast %30 : vector<1x64xf32> to vector<1x1x64xf32>
    %32 = vector.broadcast %29 : vector<1x8x1xf32> to vector<1x8x64xf32>
    %33 = vector.broadcast %31 : vector<1x1x64xf32> to vector<1x8x64xf32>
    %34 = arith.mulf %32, %33 : vector<1x8x64xf32>
    %35 = vector.extract_strided_slice %24 {offsets = [0, 0, 1], sizes = [1, 8, 1], strides = [1, 1, 1]} : vector<1x8x4xf32> to vector<1x8x1xf32>
    %36 = vector.extract_strided_slice %28 {offsets = [1, 0], sizes = [1, 64], strides = [1, 1]} : vector<4x64xf32> to vector<1x64xf32>
    %37 = vector.shape_cast %36 : vector<1x64xf32> to vector<1x1x64xf32>
    %38 = vector.broadcast %35 : vector<1x8x1xf32> to vector<1x8x64xf32>
    %39 = vector.broadcast %37 : vector<1x1x64xf32> to vector<1x8x64xf32>
    %40 = arith.mulf %38, %39 : vector<1x8x64xf32>
    %41 = arith.addf %34, %40 : vector<1x8x64xf32>
    %42 = vector.extract_strided_slice %24 {offsets = [0, 0, 2], sizes = [1, 8, 1], strides = [1, 1, 1]} : vector<1x8x4xf32> to vector<1x8x1xf32>
    %43 = vector.extract_strided_slice %28 {offsets = [2, 0], sizes = [1, 64], strides = [1, 1]} : vector<4x64xf32> to vector<1x64xf32>
    %44 = vector.shape_cast %43 : vector<1x64xf32> to vector<1x1x64xf32>
    %45 = vector.broadcast %42 : vector<1x8x1xf32> to vector<1x8x64xf32>
    %46 = vector.broadcast %44 : vector<1x1x64xf32> to vector<1x8x64xf32>
    %47 = arith.mulf %45, %46 : vector<1x8x64xf32>
    %48 = arith.addf %41, %47 : vector<1x8x64xf32>
    %49 = vector.extract_strided_slice %24 {offsets = [0, 0, 3], sizes = [1, 8, 1], strides = [1, 1, 1]} : vector<1x8x4xf32> to vector<1x8x1xf32>
    %50 = vector.extract_strided_slice %28 {offsets = [3, 0], sizes = [1, 64], strides = [1, 1]} : vector<4x64xf32> to vector<1x64xf32>
    %51 = vector.shape_cast %50 : vector<1x64xf32> to vector<1x1x64xf32>
    %52 = vector.broadcast %49 : vector<1x8x1xf32> to vector<1x8x64xf32>
    %53 = vector.broadcast %51 : vector<1x1x64xf32> to vector<1x8x64xf32>
    %54 = arith.mulf %52, %53 : vector<1x8x64xf32>
    %55 = arith.addf %48, %54 : vector<1x8x64xf32>
    %56 = tpu.iota {dimensions = array<i32: 2>} : vector<1x8x64xi32>
    %c32_i32 = arith.constant 32 : i32
    %57 = vector.broadcast %c32_i32 : i32 to vector<1x8x64xi32>
    %58 = arith.cmpi slt, %56, %57 : vector<1x8x64xi32>
    %59 = vector.shape_cast %8 : vector<1x8x1xf32> to vector<1x8x1xf32>
    %60 = vector.broadcast %59 : vector<1x8x1xf32> to vector<1x8x64xf32>
    %61 = vector.shape_cast %15 : vector<1x8x1xf32> to vector<1x8x1xf32>
    %62 = vector.broadcast %61 : vector<1x8x1xf32> to vector<1x8x64xf32>
    %63 = arith.select %58, %60, %62 : vector<1x8x64xi1>, vector<1x8x64xf32>
    %cst_17 = arith.constant 0.000000e+00 : f32
    %64 = vector.broadcast %cst_17 : f32 to vector<1x8x64xf32>
    %65 = arith.cmpf ogt, %63, %64 : vector<1x8x64xf32>
    %cst_18 = arith.constant -1.000000e+30 : f32
    %66 = vector.broadcast %cst_18 : f32 to vector<1x8x64xf32>
    %67 = arith.select %65, %66, %55 : vector<1x8x64xi1>, vector<1x8x64xf32>
    %cst_19 = arith.constant dense<0xFF800000> : vector<1x64xf32>
    %68 = vector.multi_reduction <maximumf>, %67, %cst_19 [1] : vector<1x8x64xf32> to vector<1x64xf32>
    %69 = vector.shape_cast %68 : vector<1x64xf32> to vector<1x1x64xf32>
    %70 = vector.broadcast %69 : vector<1x1x64xf32> to vector<1x8x64xf32>
    %71 = arith.subf %70, %55 : vector<1x8x64xf32>
    %c0_20 = arith.constant 0 : index
    %c0_21 = arith.constant 0 : index
    %72 = vector.load %arg4[%c0_20, %c0_21] : memref<1x64xf32, #tpu.memory_space<vmem>>, vector<1x64xf32>
    %73 = vector.shape_cast %72 : vector<1x64xf32> to vector<1x1x64xf32>
    %74 = vector.broadcast %73 : vector<1x1x64xf32> to vector<1x8x64xf32>
    %75 = arith.addf %71, %74 : vector<1x8x64xf32>
    %cst_22 = arith.constant 0.000000e+00 : f32
    %76 = vector.broadcast %cst_22 : f32 to vector<1x8x64xf32>
    %77 = arith.maximumf %75, %76 : vector<1x8x64xf32>
    %cst_23 = arith.constant 0.000000e+00 : f32
    %78 = vector.broadcast %cst_23 : f32 to vector<1x8x64xf32>
    %79 = arith.cmpf ogt, %63, %78 : vector<1x8x64xf32>
    %cst_24 = arith.constant -1.000000e+02 : f32
    %80 = vector.broadcast %cst_24 : f32 to vector<1x8x64xf32>
    %81 = arith.select %79, %80, %77 : vector<1x8x64xi1>, vector<1x8x64xf32>
    %82 = vector.shape_cast %27 : vector<1x8x128xf32> to vector<8x128xf32>
    %c0_25 = arith.constant 0 : index
    %c0_26 = arith.constant 0 : index
    %83 = vector.load %arg5[%c0_25, %c0_26] : memref<128x64xf32, #tpu.memory_space<vmem>>, vector<128x64xf32>
    %cst_27 = arith.constant dense<0.000000e+00> : vector<8x64xf32>
    %84 = tpu.matmul %82, %83, %cst_27 {dimension_numbers = #tpu.dot_dimension_numbers<[1], [0], [0], [1], [0, 0, 1, 1], [], []>} : vector<8x128xf32>, vector<128x64xf32>, vector<8x64xf32> -> vector<8x64xf32>
    %85 = vector.shape_cast %84 : vector<8x64xf32> to vector<1x8x64xf32>
    %c0_28 = arith.constant 0 : index
    %c0_29 = arith.constant 0 : index
    %86 = vector.load %arg6[%c0_28, %c0_29] : memref<1x64xf32, #tpu.memory_space<vmem>>, vector<1x64xf32>
    %87 = vector.shape_cast %86 : vector<1x64xf32> to vector<1x1x64xf32>
    %88 = vector.broadcast %87 : vector<1x1x64xf32> to vector<1x8x64xf32>
    %89 = arith.addf %85, %88 : vector<1x8x64xf32>
    %cst_30 = arith.constant 0.000000e+00 : f32
    %90 = vector.broadcast %cst_30 : f32 to vector<1x8x64xf32>
    %91 = arith.maximumf %89, %90 : vector<1x8x64xf32>
    %cst_31 = arith.constant 0.000000e+00 : f32
    %92 = vector.broadcast %cst_31 : f32 to vector<1x8x1xf32>
    %93 = arith.cmpf ogt, %21, %92 : vector<1x8x1xf32>
    %cst_32 = arith.constant -1.000000e+02 : f32
    %94 = vector.shape_cast %93 : vector<1x8x1xi1> to vector<1x8x1xi1>
    %95 = vector.broadcast %94 : vector<1x8x1xi1> to vector<1x8x64xi1>
    %96 = vector.broadcast %cst_32 : f32 to vector<1x8x64xf32>
    %97 = arith.select %95, %96, %91 : vector<1x8x64xi1>, vector<1x8x64xf32>
    %cst_33 = arith.constant dense<0xFF800000> : vector<1x64xf32>
    %98 = vector.multi_reduction <maximumf>, %97, %cst_33 [1] : vector<1x8x64xf32> to vector<1x64xf32>
    %c0_34 = arith.constant 0 : index
    %c0_35 = arith.constant 0 : index
    %99 = vector.load %arg8[%c0_34, %c0_35] : memref<64x128xf32, #tpu.memory_space<vmem>>, vector<64x128xf32>
    %cst_36 = arith.constant dense<0.000000e+00> : vector<1x128xf32>
    %100 = tpu.matmul %98, %99, %cst_36 {dimension_numbers = #tpu.dot_dimension_numbers<[1], [0], [0], [1], [0, 0, 1, 1], [], []>} : vector<1x64xf32>, vector<64x128xf32>, vector<1x128xf32> -> vector<1x128xf32>
    %c0_37 = arith.constant 0 : index
    %c0_38 = arith.constant 0 : index
    %101 = vector.load %arg9[%c0_37, %c0_38] : memref<1x128xf32, #tpu.memory_space<vmem>>, vector<1x128xf32>
    %102 = arith.addf %100, %101 : vector<1x128xf32>
    %103 = vector.shape_cast %81 : vector<1x8x64xf32> to vector<8x64xf32>
    %c0_39 = arith.constant 0 : index
    %c0_40 = arith.constant 0 : index
    %104 = vector.load %arg7[%c0_39, %c0_40] : memref<64x128xf32, #tpu.memory_space<vmem>>, vector<64x128xf32>
    %cst_41 = arith.constant dense<0.000000e+00> : vector<8x128xf32>
    %105 = tpu.matmul %103, %104, %cst_41 {dimension_numbers = #tpu.dot_dimension_numbers<[1], [0], [0], [1], [0, 0, 1, 1], [], []>} : vector<8x64xf32>, vector<64x128xf32>, vector<8x128xf32> -> vector<8x128xf32>
    %106 = vector.shape_cast %105 : vector<8x128xf32> to vector<1x8x128xf32>
    %107 = vector.shape_cast %102 : vector<1x128xf32> to vector<1x1x128xf32>
    %108 = vector.broadcast %107 : vector<1x1x128xf32> to vector<1x8x128xf32>
    %109 = arith.addf %106, %108 : vector<1x8x128xf32>
    %c0_42 = arith.constant 0 : index
    %c0_43 = arith.constant 0 : index
    %c0_44 = arith.constant 0 : index
    %110 = vector.load %arg10[%c0_42, %c0_43, %c0_44] : memref<1x8x128xf32, #tpu.memory_space<vmem>>, vector<1x8x128xf32>
    tpu.vector_store %arg10[%c0_42, %c0_43, %c0_44], %109 {strides = array<i32>} : memref<1x8x128xf32, #tpu.memory_space<vmem>>, vector<1x8x128xf32>,
    return
  }
  func.func @transform_0(%arg0: i32) -> (i32, i32, i32) {
    %c0_i32 = arith.constant 0 : i32
    %c0_i32_0 = arith.constant 0 : i32
    %c0_i32_1 = arith.constant 0 : i32
    return %arg0, %c0_i32, %c0_i32_0 : i32, i32, i32
  }
  func.func @transform_1(%arg0: i32) -> (i32, i32, i32) {
    %c0_i32 = arith.constant 0 : i32
    %c0_i32_0 = arith.constant 0 : i32
    %c0_i32_1 = arith.constant 0 : i32
    return %arg0, %c0_i32, %c0_i32_0 : i32, i32, i32
  }
  func.func @transform_2(%arg0: i32) -> (i32, i32) {
    %c0_i32 = arith.constant 0 : i32
    %c0_i32_0 = arith.constant 0 : i32
    %c0_i32_1 = arith.constant 0 : i32
    return %c0_i32, %c0_i32_0 : i32, i32
  }
  func.func @transform_3(%arg0: i32) -> (i32, i32) {
    %c0_i32 = arith.constant 0 : i32
    %c0_i32_0 = arith.constant 0 : i32
    %c0_i32_1 = arith.constant 0 : i32
    return %c0_i32, %c0_i32_0 : i32, i32
  }
  func.func @transform_4(%arg0: i32) -> (i32, i32) {
    %c0_i32 = arith.constant 0 : i32
    %c0_i32_0 = arith.constant 0 : i32
    %c0_i32_1 = arith.constant 0 : i32
    return %c0_i32, %c0_i32_0 : i32, i32
  }
  func.func @transform_5(%arg0: i32) -> (i32, i32) {
    %c0_i32 = arith.constant 0 : i32
    %c0_i32_0 = arith.constant 0 : i32
    %c0_i32_1 = arith.constant 0 : i32
    return %c0_i32, %c0_i32_0 : i32, i32
  }
  func.func @transform_6(%arg0: i32) -> (i32, i32) {
    %c0_i32 = arith.constant 0 : i32
    %c0_i32_0 = arith.constant 0 : i32
    %c0_i32_1 = arith.constant 0 : i32
    return %c0_i32, %c0_i32_0 : i32, i32
  }
  func.func @transform_7(%arg0: i32) -> (i32, i32) {
    %c0_i32 = arith.constant 0 : i32
    %c0_i32_0 = arith.constant 0 : i32
    %c0_i32_1 = arith.constant 0 : i32
    return %c0_i32, %c0_i32_0 : i32, i32
  }
  func.func @transform_8(%arg0: i32) -> (i32, i32) {
    %c0_i32 = arith.constant 0 : i32
    %c0_i32_0 = arith.constant 0 : i32
    %c0_i32_1 = arith.constant 0 : i32
    return %c0_i32, %c0_i32_0 : i32, i32
  }
  func.func @transform_9(%arg0: i32) -> (i32, i32, i32) {
    %c0_i32 = arith.constant 0 : i32
    %c0_i32_0 = arith.constant 0 : i32
    %c0_i32_1 = arith.constant 0 : i32
    return %arg0, %c0_i32, %c0_i32_0 : i32, i32, i32
  }
}

</mosaic_0001>

<bundles_post_ra>
// kernel: tpu_custom_call.1
= control target key start
LH: loop header
LB: loop body
LE: loop exit
PB: predicated region body
PF: predicated region fallthrough
CT: control target
= control target key end

     0   :  { %14 = vsyncpa [#allocation3], 0  ;;  %s1347_s0 = inlined_call_operand.vmem [shape: f32[2,8,4], index: 0, kind: input, shape index: {}]   ;;  %s1348_s1 = inlined_call_operand.vmem [shape: f32[2,8,128], index: 1, kind: input, shape index: {}]   ;;  %s1349_s2 = inlined_call_operand.vmem [shape: f32[4,64], index: 2, kind: input, shape index: {}]   ;;  %s1350_s3 = inlined_call_operand.vmem [shape: f32[1,64], index: 3, kind: input, shape index: {}]   ;;  %s1351_s4 = inlined_call_operand.vmem [shape: f32[128,64], index: 4, kind: input, shape index: {}]   ;;  %s1352_s5 = inlined_call_operand.vmem [shape: f32[1,64], index: 5, kind: input, shape index: {}]   ;;  %s1353_s6 = inlined_call_operand.vmem [shape: f32[64,128], index: 6, kind: input, shape index: {}]   ;;  %s1354_s7 = inlined_call_operand.vmem [shape: f32[64,128], index: 7, kind: input, shape index: {}]   ;;  %s1355_s8 = inlined_call_operand.vmem [shape: f32[1,128], index: 8, kind: input, shape index: {}]   ;;  %s1356_s9 = inlined_call_operand.hbm [shape: f32[2,8,128], index: 9, kind: output, shape index: {}]  }
   0x1   :  { %16 = vsyncpa [#allocation3 + $0x1], 0  ;;  %s1083_s30 = smov 0   ;;  %s1085_s10 = smov 0  }
   0x2   :  { %s1087_s11 = smov 0   ;;  %s1089_s12 = smov 0  }
   0x3 LB: > { %s1104_s13 = sadd.s32 4294967295, %s1024_s12   ;;  %s789_s14 = sadd.s32 4294967294, %s1024_s12   ;;  %s1024_s12 = sphi %s1089_s12, %s1362_s12   ;;  %s1020_s11 = sphi %s1087_s11, %s1361_s11   ;;  %s1016_s10 = sphi %s1085_s10, %s1360_s10   ;;  %s1012_s30 = sphi %s1083_s30, %s1359_s30  }
   0x4   : > { %s1108_s15 = sadd.s32 1, %s1024_s12   ;;  %s228_s16 = sadd.s32 1, %s1020_s11 }
   0x5   : > { %s225_s17 = ssub.s32 %s1024_s12, %s1108_s15  ;;  %p238_p0 = scmp.ne.s32.totalorder %s1020_s11, %s1016_s10 }
   0x6   : > { %p226_p1 = scmp.eq.s32.totalorder %s225_s17, 0  ;;  %p239_p2 = scmp.eq.s32.totalorder %s1104_s13, 1 }
   0x7   : > { %p244_p3 = scmp.ne.s32.totalorder %s1016_s10, %s1012_s30  ;;  %p245_p4 = scmp.eq.s32.totalorder %s789_s14, 1 }
   0x8   : > { %s1119_s18 = scalar_select %p226_p1, %s1020_s11, %s228_s16  }
   0x9   : > { %p1121_p5 = por %p239_p2, %p238_p0  ;;  %p1125_p6 = por %p245_p4, %p244_p3 }
   0xa   : > { %p792_p7 = scmp.ge.s32.totalorder %s1024_s12, 1  ;;  %p298_p8 = scmp.lt.s32.totalorder %s1024_s12, 3 }
   0xc   : > { %p299_p9 = pnand %p792_p7, %p298_p8 }
   0xd   : > { %p337_p10 = scmp.lt.s32.totalorder (!%p299_p9), %s1104_s13, 1  ;;  %s334_s27 = sand.u32 (!%p299_p9), 1, %s1016_s10  }
   0xe   : > { %302 = sbr.rel (%p299_p9) target bundleno = 487 (0x1e7), region = 56  ;;  %s793_s14 = sshll.u32 (!%p299_p9), %s334_s27, 3 }
   0xf   : > { %s803_s16 = sshll.u32 (!%p299_p9), %s1104_s13, 7  ;;  %s336_s17 = scalar_lea.vmem (!%p299_p9), [#allocation2], %s793_s14 }
  0x13   : > { %v444_v0 = vld [vmem:[%s1351_s4 + $0x78] sm:$0xff]  ;;  %v1026_v1 = vmov 0.0   ;;  %v443_v2 = vld [vmem:[%s1351_s4 + $0x70] sm:$0xff]  ;;  %vm1027_vm0 = vmmov 0   ;;  %s338_s25 = scalar_select %p337_p10, %s1104_s13, 1  ;;  %v1028_v3 = vmov 0   ;;  %v369_v36 = vlaneseq }
  0x14   : > { %841 = vmatprep.subr.mxu0 %v1026_v1  ;;  %873 = vmatprep.mubr.msk.f32.mxu0 %vm1027_vm0, %v1026_v1  ;;  %v442_v4 = vld [vmem:[%s1351_s4 + $0x68] sm:$0xff]  ;;  %v1029_v5 = vmov 1   ;;  %v441_v6 = vld [vmem:[%s1351_s4 + $0x60] sm:$0xff]  ;;  %vm353_vm1 = vcmask 31760   ;;  %v440_v9 = vld [vmem:[%s1351_s4 + $0x58] sm:$0xff]  ;;  %vm349_vm4 = vcmask 15360  }
  0x15   : > { %842 = vmatpush3.msra.mxu0 %v444_v0  ;;  %959 = vset.pattern.permute.xlu1 %v1028_v3  ;;  %s794_s28 = sshll.u32 %s338_s25, 3  ;;  %v439_v12 = vld [vmem:[%s1351_s4 + $0x50] sm:$0xff]  ;;  %v438_v15 = vld [vmem:[%s1351_s4 + $0x48] sm:$0xff]  ;;  %v437_v16 = vld [vmem:[%s1351_s4 + $0x40] sm:$0xff]  ;;  %v1030_v26 = vmov 2   ;;  %v1031_v27 = vmov 3  }
  0x16   : > { %843 = vmatprep.subr.mxu0 %v1026_v1  ;;  %960 = vset.pattern.permute.xlu0 %v1029_v5  ;;  %s344_s21 = scalar_lea.vmem %s1348_s1, %s794_s28  ;;  %s340_s24 = scalar_lea.vmem %s1347_s0, %s794_s28  ;;  %v436_v17 = vld [vmem:[%s1351_s4 + $0x38] sm:$0xff]  ;;  %v435_v18 = vld [vmem:[%s1351_s4 + $0x30] sm:$0xff]  ;;  %v434_v19 = vld [vmem:[%s1351_s4 + $0x28] sm:$0xff]  ;;  %v1246_v39 = vshrl.u32 %v369_v36, 7  ;;  %v405_v54 = vand.u32 127, %v369_v36  ;;  %vm410_vm8 = vcmask 523264  }
  0x17   : > { %844 = vmatpush3.msra.mxu0 %v443_v2  ;;  %876 = vmatprep.subr.mxu1 %v1026_v1  ;;  %v346_v7 = vld [vmem:[%s344_s21] sm:$0xff]  ;;  %v432_v21 = vld [vmem:[%s1351_s4 + $0x18] sm:$0xff]  ;;  %v431_v23 = vld [vmem:[%s1351_s4 + $0x10] sm:$0xff]  ;;  %s718_s21 = sshll.u32 %s336_s17, 4  ;;  %s705_s25 = scalar_lea.sflag [#allocation3], %s334_s27  ;;  %s719_s21 = int_to_ptr.vmem [resolvable:$true] %s718_s21 }
  0x18   : > { %845 = vmatprep.subr.mxu0 %v1026_v1  ;;  %892 = vmatprep.mubr.msk.f32.mxu1 %vm1027_vm0, %v1026_v1  ;;  %v345_v8 = vld [vmem:[%s340_s24] sm:$0xff]  ;;  %vm357_vm2 = vcmp.ne.f32.partialorder %v346_v7, %v346_v7  ;;  %v430_v24 = vld [vmem:[%s1351_s4 + $0x8] sm:$0xff]  ;;  %v542_v28 = vld [vmem:[%s1354_s7 + $0x38] sm:$0xff]  ;;  %v371_v41 = vsub.s32 0, %v1246_v39  ;;  %v380_v42 = vsub.s32 1, %v1246_v39  ;;  %v390_v46 = vsub.s32 2, %v1246_v39  ;;  %s1312_s24 = scalar_lea.hbm %s1356_s9, %s803_s16 }
  0x19   : > { %846 = vmatpush3.msra.mxu0 %v442_v4  ;;  %vm347_vm3 = vcmp.ne.f32.partialorder %v345_v8, %v345_v8  ;;  %v358_v10 = vsel %vm357_vm2, 1.0, %v1026_v1  ;;  %v433_v20 = vld [vmem:[%s1351_s4 + $0x20] sm:$0xff]  ;;  %vm797_vm5 = vmneg %vm357_vm2  ;;  %877 = vmatpush3.msra.mxu1 %v542_v28  ;;  %v541_v29 = vld [vmem:[%s1354_s7 + $0x30] sm:$0xff]  ;;  %v400_v53 = vsub.s32 3, %v1246_v39  ;;  %vm406_vm6 = vcmp.lt.s32.totalorder %v405_v54, 32  ;;  %s964_s26 = scalar_lea.vmem %s719_s21, 128 }
  0x1a   : > { %847 = vmatprep.subr.mxu0 %v1026_v1  ;;  %v348_v11 = vsel %vm347_vm3, 1.0, %v1026_v1  ;;  %359 = vmax.xlane.f32.xlu0 %v358_v10  ;;  %v361_v22 = vsel %vm347_vm3, 0.0, %v345_v8  ;;  %v429_v25 = vld [vmem:[%s1351_s4] sm:$0xff]  ;;  %v540_v30 = vld [vmem:[%s1354_s7 + $0x28] sm:$0xff]  ;;  %v538_v32 = vld [vmem:[%s1354_s7 + $0x18] sm:$0xff]  ;;  %p965_p11 = scmp.ne.s32.totalorder %s719_s21, %s964_s26  ;;  %s1032_s13 = smov [#allocation2]  }
  0x1b   : > { %848 = vmatpush3.msra.mxu0 %v441_v6  ;;  %v354_v13 = vsel %vm353_vm1, %v348_v11, -inf  ;;  %v350_v14 = vsel %vm349_vm4, %v348_v11, -inf  ;;  %878 = vmatprep.subr.mxu1 %v1026_v1  ;;  %v539_v31 = vld [vmem:[%s1354_s7 + $0x20] sm:$0xff]  ;;  %v537_v33 = vld [vmem:[%s1354_s7 + $0x10] sm:$0xff]  ;;  %v536_v34 = vld [vmem:[%s1354_s7 + $0x8] sm:$0xff]  ;;  %s968_s28 = sshll.u32 %s1032_s13, 4  ;;  %s969_s28 = int_to_ptr.vmem [resolvable:$false] %s968_s28 }
  0x1c   : > { %849 = vmatprep.subr.mxu0 %v1026_v1  ;;  %355 = vmax.xlane.f32.xlu1 %v354_v13  ;;  %v535_v35 = vld [vmem:[%s1354_s7] sm:$0xff]  ;;  %p966_p12 = pnand %p965_p11, %p1121_p5  ;;  %s970_s29 = scalar_lea.vmem %s969_s28, 256 }
  0x1d   : > { %850 = vmatpush3.msra.mxu0 %v440_v9  ;;  %879 = vmatpush3.msra.mxu1 %v541_v29  ;;  %v363_v43 = vld [vmem:[%s1349_s2] sm:$0xf]  ;;  %v619_v29 = vld [vmem:[%s1353_s6 + $0x10] sm:$0xff]  ;;  %p971_p0 = scmp.lt.s32.totalorder %s719_s21, %s969_s28  ;;  %p972_p1 = scmp.lt.s32.totalorder %s970_s29, %s964_s26 }
  0x1e   : > { %851 = vmatprep.subr.mxu0 %v1026_v1  ;;  %351 = vmax.xlane.f32.xlu0 %v350_v14  ;;  %v372_v45 = vrot.slane %v363_v43, %v371_v41  ;;  %v381_v47 = vrot.slane %v363_v43, %v380_v42  ;;  %v391_v51 = vrot.slane %v363_v43, %v390_v46  ;;  %v799_v2 = vld [vmem:[%s1352_s5] ss:$0 sm:$0xff]  ;;  %p967_p13 = pneg %p966_p12 }
  0x1f   : > { %852 = vmatpush3.msra.mxu0 %v439_v12  ;;  %880 = vmatprep.subr.mxu1 %v1026_v1  ;;  %v401_v57 = vrot.slane %v363_v43, %v400_v53  ;;  %v543_v36 = vld [vmem:[%s1355_s8] sm:$0x1]  ;;  %p973_p2 = por %p972_p1, %p971_p0 }
  0x20   : > { %853 = vmatprep.subr.mxu0 %v1026_v1  ;;  %881 = vmatpush3.msra.mxu1 %v540_v30  ;;  %v618_v30 = vld [vmem:[%s1353_s6 + $0x8] sm:$0xff] }
  0x21   : > { %854 = vmatpush3.msra.mxu0 %v438_v15  ;;  %882 = vmatprep.subr.mxu1 %v1026_v1  ;;  %p974_p3 = pnand %p973_p2, %p967_p13 }
  0x22   : > { %855 = vmatprep.subr.mxu0 %v1026_v1  ;;  %883 = vmatpush3.msra.mxu1 %v539_v31 }
  0x23   : > { %856 = vmatpush3.msra.mxu0 %v437_v16  ;;  %884 = vmatprep.subr.mxu1 %v1026_v1 }
  0x24   : > { %857 = vmatprep.subr.mxu0 %v1026_v1  ;;  %885 = vmatpush3.msra.mxu1 %v538_v32  ;;  %v617_v32 = vld [vmem:[%s1353_s6] sm:$0xff] }
  0x25   : > { %858 = vmatpush3.msra.mxu0 %v436_v17  ;;  %886 = vmatprep.subr.mxu1 %v1026_v1 }
  0x26   : > { %859 = vmatprep.subr.mxu0 %v1026_v1  ;;  %887 = vmatpush3.msra.mxu1 %v537_v33 }
  0x27   : > { %860 = vmatpush3.msra.mxu0 %v435_v18  ;;  %888 = vmatprep.subr.mxu1 %v1026_v1 }
  0x28   : > { %861 = vmatprep.subr.mxu0 %v1026_v1  ;;  %889 = vmatpush3.msra.mxu1 %v536_v34 }
  0x29   : > { %862 = vmatpush3.msra.mxu0 %v434_v19  ;;  %890 = vmatprep.subr.mxu1 %v1026_v1 }
  0x2a   : > { %863 = vmatprep.subr.mxu0 %v1026_v1  ;;  %891 = vmatpush3.msra.mxu1 %v535_v35 }
  0x2b   : > { %864 = vmatpush3.msra.mxu0 %v433_v20  ;;  %895 = vmatprep.subr.mxu1 %v1026_v1  ;;  %v624_v20 = vld [vmem:[%s1353_s6 + $0x38] sm:$0xff] }
  0x2c   : > { %865 = vmatprep.subr.mxu0 %v1026_v1 }
  0x2d   : > { %866 = vmatpush3.msra.mxu0 %v432_v21  ;;  %366 = vperm.xlu1 %959, %v361_v22  }
  0x2e   : > { %867 = vmatprep.subr.mxu0 %v1026_v1 }
  0x2f   : > { %868 = vmatpush3.msra.mxu0 %v431_v23  ;;  %v622_v23 = vld [vmem:[%s1353_s6 + $0x28] sm:$0xff] }
  0x30   : > { %869 = vmatprep.subr.mxu0 %v1026_v1 }
  0x31   : > { %870 = vmatpush3.msra.mxu0 %v430_v24  ;;  %961 = vset.pattern.permute.xlu1 %v1030_v26  ;;  %v796_v26 = vld [vmem:[%s1350_s3] ss:$0 sm:$0xff] }
  0x32   : > { %871 = vmatprep.subr.mxu0 %v1026_v1  ;;  %385 = vperm.xlu1 %961, %v361_v22  }
  0x33   : > { %872 = vmatpush3.msra.mxu0 %v429_v25  ;;  %v621_v25 = vld [vmem:[%s1353_s6 + $0x20] sm:$0xff] }
  0x34   : > { %874 = vmatmul.mubr.msk.f32.vlgmr.msra.gmra.mxu0 %vm797_vm5, %v346_v7  ;;  %375 = vperm.xlu0 %960, %v361_v22  }
  0x36   : > { %962 = vset.pattern.permute.xlu1 %v1031_v27 }
  0x37   : > { %395 = vperm.xlu1 %962, %v361_v22   ;;  %v623_v22 = vld [vmem:[%s1353_s6 + $0x30] sm:$0xff] }
  0x38   : > { %963 = vset.pattern.permute.xlu0 %v1031_v27  ;;  %v620_v27 = vld [vmem:[%s1353_s6 + $0x18] sm:$0xff] }
  0xa3   : > { %v360_v37 = vpop.xlane.xlu0 %359 }
  0xa4   : > { %vm524_vm9 = vcmp.gt.f32.partialorder %v360_v37, 0.0 }
  0xa5   : > { %v356_v38 = vpop.xlane.xlu1 %355 }
  0xa7   : > { %v352_v40 = vpop.xlane.xlu0 %351 }
  0xa8   : > { %v407_v61 = vsel %vm406_vm6, %v352_v40, %v356_v38 }
  0xa9   : > { %v367_v44 = vpop.permute.xlu1 %366  ;;  %vm408_vm7 = vcmp.gt.f32.partialorder %v407_v61, 0.0 }
  0xaa   : > { %v373_v50 = vmul.f32 %v372_v45, %v367_v44 }
  0xad   : > { %v386_v49 = vpop.permute.xlu1 %385 }
  0xae   : > { %v392_v55 = vmul.f32 %v391_v51, %v386_v49 }
  0xaf   : > { %v376_v48 = vpop.permute.xlu0 %375 }
  0xb0   : > { %v382_v52 = vmul.f32 %v381_v47, %v376_v48 }
  0xb2   : > { %v383_v56 = vadd.f32 %v382_v52, %v373_v50  ;;  %v396_v58 = vpop.permute.xlu1 %395 }
  0xb3   : > { %v402_v60 = vmul.f32 %v401_v57, %v396_v58 }
  0xb4   : > { %v393_v59 = vadd.f32 %v392_v55, %v383_v56 }
  0xb6   : > { %v403_v62 = vadd.f32 %v402_v60, %v393_v59 }
  0xb8   : > { %v409_v63 = vsel %vm408_vm7, -1e+30, %v403_v62 }
  0xb9   : > { %v411_v0 = vsel %vm410_vm8, %v409_v63, -inf }
  0xba   : > { %v412_v3 = vrot.slane %v411_v0, 4 }
  0xbc   : > { %v413_v7 = vmax.f32 %v411_v0, %v412_v3 }
  0xbe   : > { %v414_v10 = vrot.slane %v413_v7, 2 }
  0xc0   : > { %v415_v14 = vmax.f32 %v413_v7, %v414_v10 }
  0xc2   : > { %v416_v17 = vrot.slane %v415_v14, 1 }
  0xc4   : > { %v417_v21 = vmax.f32 %v415_v14, %v416_v17 }
  0xc6   : > { %v418_v24 = vsub.f32 %v417_v21, %v403_v62 }
  0xc8   : > { %v426_v28 = vadd.f32 %v796_v26, %v418_v24 }
  0xca   : > { %v427_v31 = vmax.f32 %v426_v28, 0.0 }
  0xcc   : > { %v428_v33 = vsel %vm408_vm7, -100.0, %v427_v31 }
  0xf4   : > { %v511_v4 = vpop.f32.mrf.mxu0 }
  0xf5   : > { %v522_v5 = vadd.f32 %v799_v2, %v511_v4 }
  0xf6   : > { %v875_v6 = vpop.f32.mrf.mxu0 }
  0xf7   : > { %v523_v8 = vmax.f32 %v522_v5, 0.0 }
  0xf9   : > { %v527_v9 = vsel %vm524_vm9, -100.0, %v523_v8 }
  0xfa   : > { %v528_v11 = vsel %vm410_vm8, %v527_v9, -inf }
  0xfb   : > { %v529_v12 = vrot.slane %v528_v11, 4 }
  0xfd   : > { %v530_v13 = vmax.f32 %v528_v11, %v529_v12 }
  0xff   : > { %v531_v15 = vrot.slane %v530_v13, 2 }
 0x101   : > { %v532_v16 = vmax.f32 %v530_v13, %v531_v15 }
 0x103   : > { %v533_v18 = vrot.slane %v532_v16, 1 }
 0x105   : > { %v534_v19 = vmax.f32 %v532_v16, %v533_v18 }
 0x107   : > { %893 = vmatmul.mubr.msk.f32.vlgmr.msra.gmra.mxu1 %vm410_vm8, %v534_v19 }
 0x108   : > { %896 = vmatpush3.msra.mxu1 %v624_v20  ;;  %911 = vmatprep.mubr.msk.f32.mxu1 %vm1027_vm0, %v1026_v1 }
 0x109   : > { %897 = vmatprep.subr.mxu1 %v1026_v1 }
 0x10a   : > { %898 = vmatpush3.msra.mxu1 %v623_v22 }
 0x10b   : > { %899 = vmatprep.subr.mxu1 %v1026_v1 }
 0x10c   : > { %900 = vmatpush3.msra.mxu1 %v622_v23 }
 0x10d   : > { %901 = vmatprep.subr.mxu1 %v1026_v1 }
 0x10e   : > { %902 = vmatpush3.msra.mxu1 %v621_v25 }
 0x10f   : > { %903 = vmatprep.subr.mxu1 %v1026_v1 }
 0x110   : > { %904 = vmatpush3.msra.mxu1 %v620_v27 }
 0x111   : > { %905 = vmatprep.subr.mxu1 %v1026_v1 }
 0x112   : > { %906 = vmatpush3.msra.mxu1 %v619_v29 }
 0x113   : > { %907 = vmatprep.subr.mxu1 %v1026_v1 }
 0x114   : > { %908 = vmatpush3.msra.mxu1 %v618_v30 }
 0x115   : > { %909 = vmatprep.subr.mxu1 %v1026_v1 }
 0x116   : > { %910 = vmatpush3.msra.mxu1 %v617_v32 }
 0x117   : > { %912 = vmatmul.mubr.msk.f32.vlgmr.msra.gmra.mxu1 %vm410_vm8, %v428_v33 }
 0x1c7   : > { %v613_v34 = vpop.f32.mrf.mxu1 }
 0x1c8   : > { %v614_v37 = vadd.f32 %v613_v34, %v543_v36 }
 0x1c9   : > { %v894_v35 = vpop.f32.mrf.mxu1 }
 0x1ca   : > { %v701_v1 = vrot.slane %v614_v37, %v371_v41 }
 0x1d7   : > { %v694_v38 = vpop.f32.mrf.mxu1 }
 0x1d8   : > { %v702_v40 = vadd.f32 %v701_v1, %v694_v38 }
 0x1d9   : > { %v913_v42 = vpop.f32.mrf.mxu1 }
 0x1da   : > { %703 = vst [vmem:[%s336_s17] sm:$0xff] %v702_v40 }
 0x1db   : > { %977 = shalt.err (!%p974_p3)
}
 0x1dc   : > { %s978_s14 = scalar_lea.hbm %s1312_s24, 128  ;;  %s982_s17 = scalar_lea.hbm %s1356_s9, 256 }
 0x1dd   : > { %p979_p4 = scmp.ne.s32.totalorder %s1312_s24, %s978_s14  ;;  %p983_p9 = scmp.lt.s32.totalorder %s1312_s24, %s1356_s9 }
 0x1de   : > { %p984_p10 = scmp.lt.s32.totalorder %s982_s17, %s978_s14 }
 0x1df   : > { %p980_p7 = pnand %p979_p4, %p1121_p5 }
 0x1e0   : > { %p985_p11 = por %p984_p10, %p983_p9 }
 0x1e1   : > { %p981_p8 = pneg %p980_p7 }
 0x1e3   : > { %p986_p12 = pnand %p985_p11, %p981_p8 }
 0x1e5   : > { %989 = shalt.err (!%p986_p12)
}
 0x1e6   : > { %914 = dma.vmem_to_hbm [thread:$0]  (%p1121_p5), %s719_s21, 128, %s1312_s24, %s705_s25  }
 0x1e7 PF: > { %p920_p13 = scmp.ge.s32.totalorder %s1024_s12, 2  ;;  %s730_s26 = sand.u32 1, %s1012_s30  }
 0x1e8   : > { %s731_s13 = scalar_lea.sflag [#allocation3], %s730_s26 }
 0x1e9   : > { %p917_p0 = pnand %p920_p13, %p1125_p6 }
 0x1eb   : > { %p918_p1 = pneg %p917_p0 }
 0x1ed   : > { %1007 = dma.done.wait (%p918_p1), %s731_s13, 128  }
 0x1ee   : > { %1009 = vsyncadd (%p918_p1), %s731_s13, 4294967168  ;;  %p19_p2 = scmp.ge.s32.totalorder %s1108_s15, 4   ;;  %s1359_s30 = smov %s1016_s10 }
 0x1ef   : > { %s1360_s10 = smov %s1020_s11  ;;  %s1361_s11 = smov %s1119_s18 }
 0x1f0   : > { %s1362_s12 = smov %s1108_s15  ;;  %21 = sbr.rel (!%p19_p2) target bundleno = 3 (0x3), region = 94 }
 0x1f5   :  { %736 = vsyncpa [#allocation3], 1 }
 0x1f6   :  { %738 = vsyncpa [#allocation3 + $0x1], 1 }

</bundles_post_ra>
